<compile_context>
chip_gen: v5e
topology: v5e:2x2
jax: 0.10.0
libtpu: 0.0.40
codegen_flags: <defaults>
</compile_context>

<pallas_src>
import functools

import jax
import jax.numpy as jnp
from jax.experimental import pallas as pl
from jax.experimental.pallas import tpu as pltpu


def _round_up(x, m):
    return (x + m - 1) // m * m


def _mixup_ce_kernel(lam_ref, pred_ref, y_ref, out_ref, *, batch, tile_b):
    """One batch tile: stable logsumexp + masked label row-sums -> partial sum."""
    pred = pred_ref[...]                                   # (TB, C), native dtype
    tb, c = pred.shape

    # Numerically stable log-sum-exp per row, accumulated in f32.
    p32 = pred.astype(jnp.float32)
    m = jnp.max(p32, axis=-1, keepdims=True)               # (TB, 1)
    lse = m + jnp.log(jnp.sum(jnp.exp(p32 - m), axis=-1, keepdims=True))

    lam = lam_ref[0, 0]

    labels = y_ref[...]                                     # (TB, 2) int32
    ya = labels[:, 0:1]                                      # (TB, 1)
    yb = labels[:, 1:2]                                      # (TB, 1)

    # Masked row sums: each row has exactly one selected element, so keeping the
    # select in the input dtype and accumulating in f32 is exact (and cheaper on
    # the VPU than a full weighted one-hot multiply).
    cls = jax.lax.broadcasted_iota(jnp.int32, (tb, c), 1)
    sa = jnp.sum(jnp.where(cls == ya, pred, 0), axis=-1, keepdims=True,
                 dtype=jnp.float32)                          # (TB, 1)  pred[row, y_a]
    sb = jnp.sum(jnp.where(cls == yb, pred, 0), axis=-1, keepdims=True,
                 dtype=jnp.float32)                          # (TB, 1)  pred[row, y_b]
    mixed = lam * sa + (1.0 - lam) * sb

    # Mask rows that fall past the real batch (ragged last tile).
    row = pl.program_id(0) * tile_b + jax.lax.broadcasted_iota(jnp.int32, (tb, 1), 0)
    per_row = jnp.where(row < batch, lse - mixed, 0.0)

    partial = jnp.sum(per_row)                               # f32 scalar
    # Independent per-tile partial (no carried accumulator) -> grid axis "parallel".
    out_ref[...] = jnp.broadcast_to(partial, out_ref.shape)


def mixup_cutmix_criterion(pred, y_a, y_b, lam, *, max_tile_b=2048,
                           target_tile_bytes=6 * 1024 * 1024,
                           vmem_limit_bytes=48 * 1024 * 1024):
    """JAX wrapper. pred: [B, C] float, y_a/y_b: [B] int, lam: float (python or traced)."""
    B, C = pred.shape
    itemsize = jnp.dtype(pred.dtype).itemsize

    # Budget for the VMEM footprint of one logits tile (lane dim padded to 128
    # internally).  The tile is double-buffered and the kernel builds a few f32
    # full-tile temporaries, so ~6 MiB keeps the total well under 48 MiB even on
    # v7x (64 MiB physical VMEM).
    row_bytes = _round_up(C, 128) * itemsize
    rows_fit = max(8, (target_tile_bytes // row_bytes) // 8 * 8)
    rows_fit = int(min(rows_fit, max_tile_b))

    if B <= rows_fit:
        tile_b = B                      # block dim == full array dim: no (8,.) constraint
        num_tiles = 1
    else:
        tile_b = rows_fit               # multiple of 8; last block may be ragged
        num_tiles = (B + tile_b - 1) // tile_b
    # TODO(synk): for very large class counts (C >= ~16k, e.g. LM vocab) also tile C
    # with an online logsumexp instead of holding a full (tile_b, C) block.

    labels = jnp.stack([y_a.astype(jnp.int32), y_b.astype(jnp.int32)], axis=-1)  # (B, 2)
    lam_arr = jnp.asarray(lam, dtype=jnp.float32).reshape(1, 1)

    partials = pl.pallas_call(
        functools.partial(_mixup_ce_kernel, batch=B, tile_b=tile_b),
        grid=(num_tiles,),
        out_shape=jax.ShapeDtypeStruct((num_tiles, 8, 128), jnp.float32),
        in_specs=[
            pl.BlockSpec(memory_space=pltpu.SMEM),            # lam scalar (1,1)
            pl.BlockSpec((tile_b, C), lambda i: (i, 0)),      # logits batch tile (no pad)
            pl.BlockSpec((tile_b, 2), lambda i: (i, 0)),      # packed labels tile
        ],
        out_specs=pl.BlockSpec((1, 8, 128), lambda i: (i, 0, 0)),
        compiler_params=pltpu.CompilerParams(
            dimension_semantics=("parallel",),
            vmem_limit_bytes=vmem_limit_bytes,
        ),
    )(lam_arr, pred, labels)

    # Tiny final reduction over per-tile partials done in XLA.
    return jnp.sum(partials[:, 0, 0]) / B


def _reference(pred, y_a, y_b, lam):
    """Pure-JAX reference: lam*CE(pred,y_a) + (1-lam)*CE(pred,y_b)."""
    logp = jax.nn.log_softmax(pred.astype(jnp.float32), axis=-1)
    ce_a = -jnp.mean(jnp.take_along_axis(logp, y_a[:, None], axis=-1))
    ce_b = -jnp.mean(jnp.take_along_axis(logp, y_b[:, None], axis=-1))
    return lam * ce_a + (1.0 - lam) * ce_b


if __name__ == "__main__":
    key = jax.random.PRNGKey(0)

    # (B, C, lam, kwargs): third case forces a tiny tile so the multi-tile /
    # ragged-last-block path is exercised on-device.
    cases = [
        (8, 16, 0.3, {}),
        (12, 200, 0.75, {}),
        (20, 256, 0.5, {"target_tile_bytes": 8 * 256 * 4}),   # tile_b=8, 3 tiles, ragged
    ]
    for (B, C, lam, kw) in cases:
        key, k1, k2, k3 = jax.random.split(key, 4)
        pred = jax.random.normal(k1, (B, C), dtype=jnp.float32)
        y_a = jax.random.randint(k2, (B,), 0, C, dtype=jnp.int32)
        y_b = jax.random.randint(k3, (B,), 0, C, dtype=jnp.int32)

        loss = mixup_cutmix_criterion(pred, y_a, y_b, lam, **kw)
        jax.block_until_ready(loss)

        ref = _reference(pred, y_a, y_b, lam)
        assert jnp.allclose(loss, ref, rtol=1e-5, atol=1e-5), (B, C, lam, loss, ref)

    print("KERNEL_OK")
</pallas_src>

<mosaic_0001>
module attributes {stable_mosaic.version = 11 : i64} {
  func.func @_mixup_ce_kernel(%arg0: i32, %arg1: memref<1x1xf32, #tpu.memory_space<smem>>, %arg2: memref<8x16xf32, #tpu.memory_space<vmem>>, %arg3: memref<8x2xi32, #tpu.memory_space<vmem>>, %arg4: memref<1x8x128xf32, #tpu.memory_space<vmem>>) attributes {dimension_semantics = [#tpu.dimension_semantics<parallel>], iteration_bounds = array<i64: 1>, scalar_prefetch = 0 : i64, scratch_operands = 0 : i64, tpu.core_type = #tpu.core_type<tc>, window_params = [{transform_indices = @transform_0, window_bounds = array<i64: 1, 1>}, {transform_indices = @transform_1, window_bounds = array<i64: 8, 16>}, {transform_indices = @transform_2, window_bounds = array<i64: 8, 2>}, {transform_indices = @transform_3, window_bounds = array<i64: 1, 8, 128>}]} {
    %c0 = arith.constant 0 : index
    %c0_0 = arith.constant 0 : index
    %0 = vector.load %arg2[%c0, %c0_0] : memref<8x16xf32, #tpu.memory_space<vmem>>, vector<8x16xf32>
    %cst = arith.constant dense<0xFF800000> : vector<8xf32>
    %1 = vector.multi_reduction <maximumf>, %0, %cst [1] : vector<8x16xf32> to vector<8xf32>
    %2 = vector.shape_cast %1 : vector<8xf32> to vector<8x1xf32>
    %3 = vector.broadcast %2 : vector<8x1xf32> to vector<8x16xf32>
    %4 = arith.subf %0, %3 : vector<8x16xf32>
    %5 = math.exp %4 : vector<8x16xf32>
    %cst_1 = arith.constant dense<0.000000e+00> : vector<8xf32>
    %6 = vector.multi_reduction <add>, %5, %cst_1 [1] : vector<8x16xf32> to vector<8xf32>
    %7 = vector.shape_cast %6 : vector<8xf32> to vector<8x1xf32>
    %8 = math.log %7 : vector<8x1xf32>
    %9 = arith.addf %2, %8 : vector<8x1xf32>
    %c0_2 = arith.constant 0 : index
    %c0_3 = arith.constant 0 : index
    %10 = memref.load %arg1[%c0_2, %c0_3] : memref<1x1xf32, #tpu.memory_space<smem>>
    %c0_4 = arith.constant 0 : index
    %c0_5 = arith.constant 0 : index
    %11 = vector.load %arg3[%c0_4, %c0_5] : memref<8x2xi32, #tpu.memory_space<vmem>>, vector<8x2xi32>
    %12 = vector.extract_strided_slice %11 {offsets = [0, 0], sizes = [8, 1], strides = [1, 1]} : vector<8x2xi32> to vector<8x1xi32>
    %13 = vector.extract_strided_slice %11 {offsets = [0, 1], sizes = [8, 1], strides = [1, 1]} : vector<8x2xi32> to vector<8x1xi32>
    %14 = tpu.iota {dimensions = array<i32: 1>} : vector<8x16xi32>
    %15 = vector.broadcast %12 : vector<8x1xi32> to vector<8x16xi32>
    %16 = arith.cmpi eq, %14, %15 : vector<8x16xi32>
    %c0_i32 = arith.constant 0 : i32
    %17 = arith.sitofp %c0_i32 : i32 to f32
    %18 = vector.broadcast %17 : f32 to vector<8x16xf32>
    %19 = arith.select %16, %0, %18 : vector<8x16xi1>, vector<8x16xf32>
    %cst_6 = arith.constant dense<0.000000e+00> : vector<8xf32>
    %20 = vector.multi_reduction <add>, %19, %cst_6 [1] : vector<8x16xf32> to vector<8xf32>
    %21 = vector.shape_cast %20 : vector<8xf32> to vector<8x1xf32>
    %22 = vector.broadcast %13 : vector<8x1xi32> to vector<8x16xi32>
    %23 = arith.cmpi eq, %14, %22 : vector<8x16xi32>
    %c0_i32_7 = arith.constant 0 : i32
    %24 = arith.sitofp %c0_i32_7 : i32 to f32
    %25 = vector.broadcast %24 : f32 to vector<8x16xf32>
    %26 = arith.select %23, %0, %25 : vector<8x16xi1>, vector<8x16xf32>
    %cst_8 = arith.constant dense<0.000000e+00> : vector<8xf32>
    %27 = vector.multi_reduction <add>, %26, %cst_8 [1] : vector<8x16xf32> to vector<8xf32>
    %28 = vector.shape_cast %27 : vector<8xf32> to vector<8x1xf32>
    %29 = vector.broadcast %10 : f32 to vector<8x1xf32>
    %30 = arith.mulf %29, %21 : vector<8x1xf32>
    %cst_9 = arith.constant 1.000000e+00 : f32
    %31 = arith.subf %cst_9, %10 : f32
    %32 = vector.broadcast %31 : f32 to vector<8x1xf32>
    %33 = arith.mulf %32, %28 : vector<8x1xf32>
    %34 = arith.addf %30, %33 : vector<8x1xf32>
    %c8_i32 = arith.constant 8 : i32
    %35 = arith.muli %arg0, %c8_i32 : i32
    %36 = tpu.iota {dimensions = array<i32: 0>} : vector<8x1xi32>
    %37 = vector.broadcast %35 : i32 to vector<8x1xi32>
    %38 = arith.addi %37, %36 : vector<8x1xi32>
    %c8_i32_10 = arith.constant 8 : i32
    %39 = vector.broadcast %c8_i32_10 : i32 to vector<8x1xi32>
    %40 = arith.cmpi slt, %38, %39 : vector<8x1xi32>
    %41 = arith.subf %9, %34 : vector<8x1xf32>
    %cst_11 = arith.constant 0.000000e+00 : f32
    %42 = vector.broadcast %cst_11 : f32 to vector<8x1xf32>
    %43 = arith.select %40, %41, %42 : vector<8x1xi1>, vector<8x1xf32>
    %44 = vector.shape_cast %43 : vector<8x1xf32> to vector<1x8x1xf32>
    %cst_12 = arith.constant dense<0.000000e+00> : vector<1xf32>
    %45 = vector.multi_reduction <add>, %44, %cst_12 [1, 2] : vector<1x8x1xf32> to vector<1xf32>
    %46 = vector.shape_cast %45 : vector<1xf32> to vector<1x1x1xf32>
    %47 = vector.extract %46[0, 0, 0] : f32 from vector<1x1x1xf32>
    %48 = vector.broadcast %47 : f32 to vector<1x8x128xf32>
    %c0_13 = arith.constant 0 : index
    %c0_14 = arith.constant 0 : index
    %c0_15 = arith.constant 0 : index
    %49 = vector.load %arg4[%c0_13, %c0_14, %c0_15] : memref<1x8x128xf32, #tpu.memory_space<vmem>>, vector<1x8x128xf32>
    tpu.vector_store %arg4[%c0_13, %c0_14, %c0_15], %48 {strides = array<i32>} : memref<1x8x128xf32, #tpu.memory_space<vmem>>, vector<1x8x128xf32>,
    return
  }
  func.func @transform_0(%arg0: i32) -> (i32, i32) {
    %c0_i32 = arith.constant 0 : i32
    %c0_i32_0 = arith.constant 0 : i32
    %c0_i32_1 = arith.constant 0 : i32
    return %c0_i32, %c0_i32_0 : i32, i32
  }
  func.func @transform_1(%arg0: i32) -> (i32, i32) {
    %c0_i32 = arith.constant 0 : i32
    %c0_i32_0 = arith.constant 0 : i32
    return %arg0, %c0_i32 : i32, i32
  }
  func.func @transform_2(%arg0: i32) -> (i32, i32) {
    %c0_i32 = arith.constant 0 : i32
    %c0_i32_0 = arith.constant 0 : i32
    return %arg0, %c0_i32 : i32, i32
  }
  func.func @transform_3(%arg0: i32) -> (i32, i32, i32) {
    %c0_i32 = arith.constant 0 : i32
    %c0_i32_0 = arith.constant 0 : i32
    %c0_i32_1 = arith.constant 0 : i32
    return %arg0, %c0_i32, %c0_i32_0 : i32, i32, i32
  }
}

</mosaic_0001>

<bundles_post_ra>
// kernel: tpu_custom_call.1
= control target key start
LH: loop header
LB: loop body
LE: loop exit
PB: predicated region body
PF: predicated region fallthrough
CT: control target
= control target key end

     0   :  { %vm17_vm0 = vcmask 130048   ;;  %v131_v2 = vmov 0   ;;  %v132_v4 = vmov 1   ;;  %s173_s0 = inlined_call_operand.<no memory space> [shape: f32[1,1], index: 0, kind: input, shape index: {}]   ;;  %s174_s1 = inlined_call_operand.vmem [shape: f32[8,16], index: 1, kind: input, shape index: {}]   ;;  %s175_s2 = inlined_call_operand.vmem [shape: s32[8,2], index: 2, kind: input, shape index: {}]   ;;  %s176_s3 = inlined_call_operand.hbm [shape: f32[1,8,128], index: 3, kind: output, shape index: {}]  }
   0x1   :  { %v16_v0 = vld [vmem:[%s174_s1] sm:$0xff]  ;;  %98 = vset.pattern.permute.xlu0 %v131_v2  ;;  %99 = vset.pattern.permute.xlu1 %v132_v4 }
   0x2   :  { %v18_v1 = vsel %vm17_vm0, %v16_v0, -inf  ;;  %v31_v3 = vld [vmem:[%s175_s2] sm:$0xff] }
   0x3   :  { %9 = vsyncpa [#allocation4], 0  ;;  %19 = vmax.xlane.f32.xlu0 %v18_v1  ;;  %43 = vperm.xlu1 %99, %v31_v3   ;;  %v32_v10 = vlaneseq  ;;  %s52_s16 = ssub.f32 1.0, %s173_s0  ;;  %v50_v21 = vstv %s173_s0  ;;  %vm64_vm3 = vcmask 7168   ;;  %s133_s0 = smov [#allocation3]  }
   0x4   :  { %s82_s19 = sshll.u32 %s133_s0, 4  ;;  %s84_s22 = sshll.u32 %s176_s3, 4  ;;  %s83_s19 = int_to_ptr.vmem [resolvable:$true] %s82_s19  ;;  %s85_s22 = int_to_ptr.hbm [resolvable:$true] %s84_s22 }
   0x5   :  { %v33_v11 = vand.u32 127, %v32_v10  ;;  %v53_v22 = vstv %s52_s16 }
  0x17   :  { %35 = vperm.xlu0 %98, %v31_v3  }
  0x1f   :  { %100 = vset.pattern.permute.xlu0 %v132_v4 }
  0x75   :  { %v44_v13 = vpop.permute.xlu1 %43 }
  0x76   :  { %v20_v5 = vpop.xlane.xlu0 %19  ;;  %vm45_vm2 = vcmp.eq.s32.totalorder %v33_v11, %v44_v13 }
  0x77   :  { %v21_v6 = vsub.f32 %v16_v0, %v20_v5  ;;  %v46_v16 = vsel %vm45_vm2, %v16_v0, 0.0 }
  0x78   :  { %v47_v17 = vsel %vm17_vm0, %v46_v16, 0.0 }
  0x79   :  { %v22_v7 = vmul.f32 1.442695, %v21_v6 }
  0x7b   :  { %101 = vpow2.f32 %v22_v7 }
  0x81   :  { %v102_v8 = vpop.eup %101 }
  0x82   :  { %v24_v9 = vsel %vm17_vm0, %v102_v8, 0.0 }
  0x83   :  { %25 = vadd.xlane.f32.xlu1 %v24_v9 }
  0x89   :  { %v36_v12 = vpop.permute.xlu0 %35 }
  0x8a   :  { %vm37_vm1 = vcmp.eq.s32.totalorder %v33_v11, %v36_v12 }
  0x8b   :  { %v38_v14 = vsel %vm37_vm1, %v16_v0, 0.0 }
  0x8c   :  { %v39_v15 = vsel %vm17_vm0, %v38_v14, 0.0 }
  0x8d   :  { %40 = vadd.xlane.f32.xlu2 %v39_v15 }
  0x95   :  { %48 = vadd.xlane.f32.xlu2 %v47_v17 }
  0xf6   :  { %v26_v18 = vpop.xlane.xlu1 %25 }
  0xf7   :  { %103 = vlog2.f32 %v26_v18 }
  0xfd   :  { %v104_v20 = vpop.eup %103 }
  0xfe   :  { %v28_v23 = vmul.f32 0.6931472, %v104_v20 }
 0x100   :  { %v41_v19 = vpop.xlane.xlu2 %40  ;;  %v29_v27 = vadd.f32 %v28_v23, %v20_v5 }
 0x101   :  { %v51_v25 = vmul.f32 %v50_v21, %v41_v19 }
 0x108   :  { %v49_v24 = vpop.xlane.xlu2 %48 }
 0x109   :  { %v54_v26 = vmul.f32 %v53_v22, %v49_v24 }
 0x10b   :  { %v55_v28 = vadd.f32 %v54_v26, %v51_v25 }
 0x10d   :  { %v62_v29 = vsub.f32 %v29_v27, %v55_v28 }
 0x10f   :  { %v65_v30 = vsel %vm64_vm3, %v62_v29, 0.0 }
 0x110   :  { %66 = vadd.xlane.f32.xlu2 %v65_v30 }
 0x183   :  { %v67_v31 = vpop.xlane.xlu2 %66 }
 0x184   :  { %v68_v32 = vrot.slane %v67_v31, 4 }
 0x186   :  { %v69_v33 = vadd.f32 %v68_v32, %v67_v31 }
 0x188   :  { %v70_v34 = vrot.slane %v69_v33, 2 }
 0x18a   :  { %v71_v35 = vadd.f32 %v70_v34, %v69_v33 }
 0x18c   :  { %v72_v36 = vrot.slane %v71_v35, 1 }
 0x18e   :  { %v73_v37 = vadd.f32 %v72_v36, %v71_v35 }
 0x190   :  { %93 = vpush %v73_v37 }
 0x1c1   :  { %s94_s23 = spop %93 }
 0x1c2   :  { %v75_v38 = vstv %s94_s23 }
 0x1c3   :  { %76 = vst [vmem:[#allocation3] sm:$0xff] %v75_v38 }
 0x1c4   :  { %87 = dma.vmem_to_hbm [thread:$0]  %s83_s19, 128, %s85_s22, [#allocation4]  }
 0x1c5   :  { %129 = dma.done.wait [#allocation4], 128  }
 0x1c6   :  { %130 = vsyncadd [#allocation4], 4294967168 }
 0x1c7   :  { %92 = vsyncpa [#allocation4], 1 }

</bundles_post_ra>
